<compile_context>
chip_gen: v7x
topology: tpu7x:2x2x1
jax: 0.10.0
libtpu: 0.0.40
codegen_flags: <defaults>
</compile_context>

<pallas_src>
import jax
import jax.numpy as jnp
from jax import lax
from jax.experimental import pallas as pl
from jax.experimental.pallas import tpu as pltpu


def pool_linear_kernel(x_ref, w_ref, y_ref, acc_ref):
    """Streamed seq-max + Linear (bias-free; bias cancels in the BN epilogue).

    Grid = (N_tiles, S_tiles); the S (reduction) axis is innermost/"arbitrary".
      x_ref  : [TN, TS, D]  streamed block of the T5 last_hidden_state (bf16)
      w_ref  : [D, E]       Linear weight (bf16, x @ W layout), resident
      y_ref  : [TN, E]      pre-BatchNorm activations (f32), written at last S step
      acc_ref: [TN, D]      running max over the sequence dimension (scratch)
    """
    s = pl.program_id(1)

    @pl.when(s == 0)
    def _():
        acc_ref[...] = jnp.full(acc_ref.shape, -jnp.inf, acc_ref.dtype)

    # In-tile reduce over the S axis goes to the XLU; only a single elementwise
    # maximum against the resident accumulator hits the VPU per tile.
    tile_max = jnp.max(x_ref[...], axis=1).astype(acc_ref.dtype)
    acc_ref[...] = jnp.maximum(acc_ref[...], tile_max)

    # Linear on the fully pooled rows: bf16 operands feed the MXU at full rate,
    # accumulation stays f32.
    @pl.when(s == pl.num_programs(1) - 1)
    def _():
        pooled = acc_ref[...].astype(jnp.bfloat16)
        y_ref[...] = jnp.dot(pooled, w_ref[...],
                             preferred_element_type=jnp.float32)


def batchnorm_kernel(y_ref, gamma_ref, beta_ref, out_ref):
    """BatchNorm1d (training mode, biased batch variance, eps=1e-5), folded affine.

    Full-batch statistics require all of y[N, E]; kept as a tiny separate
    kernel so the heavy streamed pass stays embarrassingly parallel over N.
    """
    y = y_ref[...]
    mean = jnp.mean(y, axis=0, keepdims=True)
    diff = y - mean
    var = jnp.mean(diff * diff, axis=0, keepdims=True)
    inv_std = lax.rsqrt(var + 1e-5)
    scale = gamma_ref[...] * inv_std                  # [1, E]
    shift = beta_ref[...] - mean * scale              # [1, E]
    out_ref[...] = y * scale + shift                  # single multiply-add pass


def _device_kind():
    try:
        return jax.devices()[0].device_kind.lower()
    except Exception:
        return ""


def _pick_tile(dim, cap, align):
    """Largest multiple of `align` that divides `dim` and is <= cap (else dim)."""
    best = None
    t = align
    while t <= min(dim, cap):
        if dim % t == 0:
            best = t
        t += align
    return best if best is not None else dim


def language_encoder_forward(x, w, b, gamma, beta, *, tn=None, ts=None,
                             vmem_limit_bytes=None):
    """x: [N, S, D] (f32 or bf16), w: [D, E], b/gamma/beta: [E]. Returns [N, E] f32.

    `b` is accepted for API parity with nn.Linear but never streamed: the
    BatchNorm mean-subtraction cancels a per-feature constant bias exactly.
    """
    del b  # cancels exactly in the BatchNorm epilogue
    N, S, D = x.shape
    E = w.shape[1]

    kind = _device_kind()
    # v5e/v6e: 128 MiB physical VMEM; v7x: only 64 MiB per TensorCore.
    if vmem_limit_bytes is None:
        vmem_limit_bytes = (100 * 1024 * 1024
                            if ("v5" in kind or "v6" in kind)
                            else 48 * 1024 * 1024)
    # Max is exact in bf16; bf16 accumulator halves VPU work on chips with
    # bf16 VALUs (v6e/v7x).  v5e has no bf16 VPU -> keep f32 there.
    acc_dtype = jnp.float32 if "v5" in kind else jnp.bfloat16

    # Large, aligned tiles so the HBM-bound x stream isn't overhead-dominated:
    # tn multiple of 8 (f32/lane layout, MXU row fill), ts multiple of 16
    # (bf16 native sublane tile), both capped by the VMEM budget below.
    if tn is None:
        tn = _pick_tile(N, 256, 8)
    if ts is None:
        ts = _pick_tile(S, 128, 16) if S >= 16 else S

    # Demo-shape constraints; production shapes that don't divide should be
    # padded in the wrapper (-inf for the max-pool, 0 for the matmul).
    assert N % tn == 0 and S % ts == 0, "N/S must be divisible by tile sizes"
    assert tn % 8 == 0 and D % 128 == 0 and E % 128 == 0
    assert ts % 16 == 0 or ts == S, "ts should be a multiple of 16 (bf16 packing)"

    # Static VMEM budget check: double-buffered x + double-buffered w (the
    # constant index map still reserves both buffers) + double-buffered y + acc.
    x_block = tn * ts * D * 2
    w_bytes = D * E * 2
    y_block = tn * E * 4
    acc_bytes = tn * D * jnp.dtype(acc_dtype).itemsize
    budget = 2 * x_block + 2 * w_bytes + 2 * y_block + acc_bytes
    assert budget <= vmem_limit_bytes, (
        f"tile budget {budget/2**20:.1f} MiB exceeds VMEM limit "
        f"{vmem_limit_bytes/2**20:.1f} MiB; shrink tn/ts")

    x_bf = x.astype(jnp.bfloat16)          # half the dominant HBM traffic
    w_bf = w.astype(jnp.bfloat16)          # MXU-native weights
    g2 = gamma.reshape(1, E).astype(jnp.float32)
    be2 = beta.reshape(1, E).astype(jnp.float32)

    # Pass 1: streamed max-pool + Linear.
    y = pl.pallas_call(
        pool_linear_kernel,
        out_shape=jax.ShapeDtypeStruct((N, E), jnp.float32),
        grid=(N // tn, S // ts),
        in_specs=[
            pl.BlockSpec((tn, ts, D), lambda i, s: (i, s, 0)),
            pl.BlockSpec((D, E), lambda i, s: (0, 0)),
        ],
        out_specs=pl.BlockSpec((tn, E), lambda i, s: (i, 0)),
        scratch_shapes=[pltpu.VMEM((tn, D), acc_dtype)],
        compiler_params=pltpu.CompilerParams(
            dimension_semantics=("parallel", "arbitrary"),
            vmem_limit_bytes=vmem_limit_bytes,
        ),
    )(x_bf, w_bf)

    # Pass 2: full-batch BatchNorm epilogue over y (tiny: N*E*4 bytes).
    # TODO(synk): for production N where N*E*4 doesn't fit VMEM, emit per-tile
    # sum / sum-of-squares from pass 1 and finalize in a stats kernel instead.
    assert N * E * 4 <= 16 * 1024 * 1024, "BN epilogue assumes y fits in VMEM"
    out = pl.pallas_call(
        batchnorm_kernel,
        out_shape=jax.ShapeDtypeStruct((N, E), jnp.float32),
        grid=(1,),
        in_specs=[
            pl.BlockSpec((N, E), lambda i: (0, 0)),
            pl.BlockSpec((1, E), lambda i: (0, 0)),
            pl.BlockSpec((1, E), lambda i: (0, 0)),
        ],
        out_specs=pl.BlockSpec((N, E), lambda i: (0, 0)),
    )(y, g2, be2)
    return out


def reference_forward(x, w, b, gamma, beta):
    """Pure-JAX reference mirroring the kernel's dtype policy (bf16 matmul).

    Keeps the Linear bias to demonstrate it cancels under BatchNorm.
    """
    pooled = jnp.max(x.astype(jnp.float32), axis=1).astype(jnp.bfloat16)
    y = jnp.dot(pooled, w.astype(jnp.bfloat16),
                preferred_element_type=jnp.float32) + b
    mean = jnp.mean(y, axis=0, keepdims=True)
    var = jnp.mean((y - mean) ** 2, axis=0, keepdims=True)
    inv_std = lax.rsqrt(var + 1e-5)
    scale = gamma * inv_std
    shift = beta - mean * scale
    return y * scale + shift


if __name__ == "__main__":
    # TODO(synk): the T5 tokenizer + frozen T5EncoderModel (and the unused
    # self.intra_module TransformerEncoderLayers) have no Pallas equivalent;
    # we synthesize the encoder's last_hidden_state directly.
    key = jax.random.PRNGKey(0)
    batch_size = 2          # number of descriptions
    num_sentence = 8        # sentences per description
    N = batch_size * num_sentence   # 16 pooled rows
    S = 16                  # padded token sequence length
    D = 256                 # synthetic T5 hidden size (lane-dense multiple of 128)
    E = 128                 # embedding_dim (lane-dense multiple of 128)

    k_x, k_w, k_b, k_g, k_be = jax.random.split(key, 5)

    # Synthetic "last_hidden_state" from the frozen T5 encoder, streamed as bf16.
    # Note: like the PyTorch module, the max pools over padded token positions too.
    x = jax.random.normal(k_x, (N, S, D), dtype=jnp.float32).astype(jnp.bfloat16)

    # PyTorch nn.Linear-style init: U(-1/sqrt(D), 1/sqrt(D)).
    bound = 1.0 / jnp.sqrt(jnp.float32(D))
    w = jax.random.uniform(k_w, (D, E), jnp.float32, -bound, bound)
    b = jax.random.uniform(k_b, (E,), jnp.float32, -bound, bound)
    # BatchNorm1d init: weight=1, bias=0 (perturbed slightly so they matter).
    gamma = jnp.ones((E,), jnp.float32) + 0.01 * jax.random.normal(k_g, (E,))
    beta = jnp.zeros((E,), jnp.float32) + 0.01 * jax.random.normal(k_be, (E,))

    out = language_encoder_forward(x, w, b, gamma, beta)
    out = jax.block_until_ready(out)

    ref = reference_forward(x, w, b, gamma, beta)
    assert out.shape == (N, E)
    assert jnp.allclose(out, ref, atol=1e-3, rtol=1e-3), "mismatch vs reference"

    print("KERNEL_OK")
</pallas_src>

<mosaic_0001>
module attributes {stable_mosaic.version = 11 : i64} {
  func.func @pool_linear_kernel(%arg0: i32, %arg1: i32, %arg2: memref<16x16x256xbf16, #tpu.memory_space<vmem>>, %arg3: memref<256x128xbf16, #tpu.memory_space<vmem>>, %arg4: memref<16x128xf32, #tpu.memory_space<vmem>>, %arg5: memref<16x256xbf16, #tpu.memory_space<vmem>>) attributes {dimension_semantics = [#tpu.dimension_semantics<parallel>, #tpu.dimension_semantics<arbitrary>], iteration_bounds = array<i64: 1, 1>, scalar_prefetch = 0 : i64, scratch_operands = 1 : i64, tpu.core_type = #tpu.core_type<tc>, window_params = [{transform_indices = @transform_0, window_bounds = array<i64: 16, 16, 256>}, {pipeline_mode = #tpu.pipeline_mode<synchronous>, transform_indices = @transform_1, window_bounds = array<i64: 256, 128>}, {transform_indices = @transform_2, window_bounds = array<i64: 16, 128>}]} {
    %c0_i32 = arith.constant 0 : i32
    %0 = arith.cmpi eq, %arg1, %c0_i32 : i32
    %1 = arith.extui %0 : i1 to i32
    %c0_i32_0 = arith.constant 0 : i32
    %2 = arith.cmpi ne, %1, %c0_i32_0 : i32
    scf.if %2 {
      %cst_9 = arith.constant 0xFF80 : bf16
      %11 = vector.broadcast %cst_9 : bf16 to vector<16x256xbf16>
      %c0_10 = arith.constant 0 : index
      %c0_11 = arith.constant 0 : index
      %12 = vector.load %arg5[%c0_10, %c0_11] : memref<16x256xbf16, #tpu.memory_space<vmem>>, vector<16x256xbf16>
      tpu.vector_store %arg5[%c0_10, %c0_11], %11 {strides = array<i32>} : memref<16x256xbf16, #tpu.memory_space<vmem>>, vector<16x256xbf16>,
    } else {
    }
    %c0 = arith.constant 0 : index
    %c0_1 = arith.constant 0 : index
    %c0_2 = arith.constant 0 : index
    %3 = vector.load %arg2[%c0, %c0_1, %c0_2] : memref<16x16x256xbf16, #tpu.memory_space<vmem>>, vector<16x16x256xbf16>
    %cst = arith.constant dense<0xFF80> : vector<16x256xbf16>
    %4 = vector.multi_reduction <maximumf>, %3, %cst [1] : vector<16x16x256xbf16> to vector<16x256xbf16>
    %c0_3 = arith.constant 0 : index
    %c0_4 = arith.constant 0 : index
    %5 = vector.load %arg5[%c0_3, %c0_4] : memref<16x256xbf16, #tpu.memory_space<vmem>>, vector<16x256xbf16>
    %6 = arith.maximumf %5, %4 : vector<16x256xbf16>
    %c0_5 = arith.constant 0 : index
    %c0_6 = arith.constant 0 : index
    %7 = vector.load %arg5[%c0_5, %c0_6] : memref<16x256xbf16, #tpu.memory_space<vmem>>, vector<16x256xbf16>
    tpu.vector_store %arg5[%c0_5, %c0_6], %6 {strides = array<i32>} : memref<16x256xbf16, #tpu.memory_space<vmem>>, vector<16x256xbf16>,
    %c0_i32_7 = arith.constant 0 : i32
    %8 = arith.cmpi eq, %arg1, %c0_i32_7 : i32
    %9 = arith.extui %8 : i1 to i32
    %c0_i32_8 = arith.constant 0 : i32
    %10 = arith.cmpi ne, %9, %c0_i32_8 : i32
    scf.if %10 {
      %c0_9 = arith.constant 0 : index
      %c0_10 = arith.constant 0 : index
      %11 = vector.load %arg5[%c0_9, %c0_10] : memref<16x256xbf16, #tpu.memory_space<vmem>>, vector<16x256xbf16>
      %c0_11 = arith.constant 0 : index
      %c0_12 = arith.constant 0 : index
      %12 = vector.load %arg3[%c0_11, %c0_12] : memref<256x128xbf16, #tpu.memory_space<vmem>>, vector<256x128xbf16>
      %cst_13 = arith.constant dense<0.000000e+00> : vector<16x128xf32>
      %13 = tpu.matmul %11, %12, %cst_13 {dimension_numbers = #tpu.dot_dimension_numbers<[1], [0], [0], [1], [0, 0, 1, 1], [], []>} : vector<16x256xbf16>, vector<256x128xbf16>, vector<16x128xf32> -> vector<16x128xf32>
      %c0_14 = arith.constant 0 : index
      %c0_15 = arith.constant 0 : index
      %14 = vector.load %arg4[%c0_14, %c0_15] : memref<16x128xf32, #tpu.memory_space<vmem>>, vector<16x128xf32>
      tpu.vector_store %arg4[%c0_14, %c0_15], %13 {strides = array<i32>} : memref<16x128xf32, #tpu.memory_space<vmem>>, vector<16x128xf32>,
    } else {
    }
    return
  }
  func.func @transform_0(%arg0: i32, %arg1: i32) -> (i32, i32, i32) {
    %c0_i32 = arith.constant 0 : i32
    %c0_i32_0 = arith.constant 0 : i32
    return %arg0, %arg1, %c0_i32 : i32, i32, i32
  }
  func.func @transform_1(%arg0: i32, %arg1: i32) -> (i32, i32) {
    %c0_i32 = arith.constant 0 : i32
    %c0_i32_0 = arith.constant 0 : i32
    %c0_i32_1 = arith.constant 0 : i32
    return %c0_i32, %c0_i32_0 : i32, i32
  }
  func.func @transform_2(%arg0: i32, %arg1: i32) -> (i32, i32) {
    %c0_i32 = arith.constant 0 : i32
    %c0_i32_0 = arith.constant 0 : i32
    return %arg0, %c0_i32 : i32, i32
  }
}

</mosaic_0001>

<bundles_post_ra>
// kernel: tpu_custom_call.1
= control target key start
LH: loop header
LB: loop body
LE: loop exit
PB: predicated region body
PF: predicated region fallthrough
CT: control target
= control target key end

     0   :  { %7 = vsyncpa [#allocation4], 0  ;;  %s1376_s0 = inlined_call_operand.hbm [shape: bf16[16,16,256], index: 0, kind: input, shape index: {}]   ;;  %s1377_s1 = inlined_call_operand.hbm [shape: bf16[256,128], index: 1, kind: input, shape index: {}]   ;;  %s1378_s2 = inlined_call_operand.hbm [shape: f32[16,128], index: 2, kind: output, shape index: {}]  }
   0x1   :  { %8 = vsyncpa [#allocation7], 0 }
   0x2   :  { %9 = vsyncpa [#allocation5], 0  ;;  %s1077_s9 = smov [#allocation3]   ;;  %s1005_s13 = scalar_lea.hbm %s1376_s0, 4096 }
   0x3   :  { %s15_s10 = sshll.u32 %s1077_s9, 4  ;;  %p1006_p0 = scmp.ne.s32.totalorder %s1376_s0, %s1005_s13  ;;  %s16_s10 = int_to_ptr.vmem [resolvable:$true] %s15_s10 }
   0x4   :  { %p1009_p1 = scmp.lt.u32.totalorder %s1005_s13, %s1376_s0 }
   0x6   :  { %p1011_p2 = pnand %p1009_p1, %p1006_p0 }
   0x8   :  { %1014 = shalt.err (!%p1011_p2)
}
   0x9   :  { %s1015_s18 = scalar_lea.vmem %s16_s10, 4096  ;;  %p1020_p4 = scmp.lt.s32.totalorder %s16_s10, %s16_s10 }
   0xa   :  { %p1016_p3 = scmp.ne.s32.totalorder %s16_s10, %s1015_s18  ;;  %p1021_p5 = scmp.lt.s32.totalorder %s1015_s18, %s1015_s18 }
   0xc   :  { %p1022_p6 = por %p1021_p5, %p1020_p4 }
   0xe   :  { %p1023_p7 = pnand %p1022_p6, %p1016_p3 }
  0x10   :  { %1026 = shalt.err (!%p1023_p7)
}
  0x11   :  { %s1078_s19 = smov 128   ;;  %s1079_s20 = smov 8  }
  0x12   :  { %21 = dma.hbm_to_vmem [thread:$0]  %s1376_s0, 4096, %s16_s10, [#allocation4], %s1078_s19, %s1078_s19, %s1079_s20  }
  0x13   :  { %s1080_s23 = smov [#allocation6]   ;;  %s1027_s27 = scalar_lea.hbm %s1377_s1, 2048 }
  0x14   :  { %s27_s24 = sshll.u32 %s1080_s23, 4  ;;  %p1028_p8 = scmp.ne.s32.totalorder %s1377_s1, %s1027_s27  ;;  %s28_s24 = int_to_ptr.vmem [resolvable:$true] %s27_s24 }
  0x15   :  { %p1031_p9 = scmp.lt.u32.totalorder %s1027_s27, %s1377_s1 }
  0x17   :  { %p1033_p10 = pnand %p1031_p9, %p1028_p8 }
  0x19   :  { %1036 = shalt.err (!%p1033_p10)
}
  0x1a   :  { %s1037_s4 = scalar_lea.vmem %s28_s24, 2048  ;;  %p1042_p12 = scmp.lt.s32.totalorder %s28_s24, %s28_s24 }
  0x1b   :  { %p1038_p11 = scmp.ne.s32.totalorder %s28_s24, %s1037_s4  ;;  %p1043_p13 = scmp.lt.s32.totalorder %s1037_s4, %s1037_s4 }
  0x1d   :  { %p1044_p0 = por %p1043_p13, %p1042_p12 }
  0x1f   :  { %p1045_p1 = pnand %p1044_p0, %p1038_p11 }
  0x21   :  { %1048 = shalt.err (!%p1045_p1)
}
  0x22   :  { %s1081_s0 = smov 64   ;;  %s1082_s5 = smov 4  }
  0x23   :  { %33 = dma.hbm_to_vmem [thread:$0]  %s1377_s1, 2048, %s28_s24, [#allocation7], %s1081_s0, %s1081_s0, %s1082_s5  }
  0x24   :  { %1071 = dma.done.wait [#allocation4], 4096  }
  0x25   :  { %1072 = vsyncadd [#allocation4], 4294963200 }
  0x26   :  { %1073 = dma.done.wait [#allocation7], 2048  }
  0x27   :  { %1074 = vsyncadd [#allocation7], 4294965248  ;;  %v941_v0 = vld [vmem:[#allocation6 + $0x40] sm:$0xff]   ;;  %v943_v2 = vld [vmem:[#allocation6 + $0x48] sm:$0xff]   ;;  %vm626_vm0 = vcmask 1041409   ;;  %vm628_vm1 = vcmask 1042434  }
  0x28   :  { %v942_v1 = vld [vmem:[#allocation6] sm:$0xff]   ;;  %911 = vmatprep.subr.bf16.mxu0 %v941_v0  ;;  %v944_v3 = vld [vmem:[#allocation6 + $0x8] sm:$0xff]   ;;  %v945_v4 = vld [vmem:[#allocation6 + $0x50] sm:$0xff]   ;;  %vm630_vm2 = vcmask 1043459   ;;  %vm632_vm3 = vcmask 1044484   ;;  %vm634_vm4 = vcmask 1045509  }
  0x29   :  { %912 = vmatpush3.bf16.msra.mxu0 %v942_v1  ;;  %v946_v5 = vld [vmem:[#allocation6 + $0x10] sm:$0xff]   ;;  %v947_v6 = vld [vmem:[#allocation6 + $0x58] sm:$0xff]   ;;  %v949_v8 = vld [vmem:[#allocation6 + $0x60] sm:$0xff]   ;;  %vm636_vm5 = vcmask 1046534   ;;  %vm638_vm6 = vcmask 1047559   ;;  %s1084_s1 = smov [#allocation8]  }
  0x2a   :  { %913 = vmatprep.subr.bf16.mxu0 %v943_v2  ;;  %v948_v7 = vld [vmem:[#allocation6 + $0x18] sm:$0xff]   ;;  %v950_v9 = vld [vmem:[#allocation6 + $0x20] sm:$0xff]   ;;  %v951_v10 = vld [vmem:[#allocation6 + $0x68] sm:$0xff]   ;;  %s850_s8 = sshll.u32 %s1084_s1, 4  ;;  %s851_s8 = int_to_ptr.vmem [resolvable:$true] %s850_s8 }
  0x2b   :  { %v952_v11 = vld [vmem:[#allocation6 + $0x28] sm:$0xff]   ;;  %v953_v12 = vld [vmem:[#allocation6 + $0x70] sm:$0xff]   ;;  %v955_v14 = vld [vmem:[#allocation6 + $0x78] sm:$0xff]   ;;  %s1049_s9 = scalar_lea.vmem %s851_s8, 256  ;;  %p1054_p3 = scmp.lt.s32.totalorder %s851_s8, %s851_s8 }
  0x2c   :  { %v954_v13 = vld [vmem:[#allocation6 + $0x30] sm:$0xff]   ;;  %v956_v15 = vld [vmem:[#allocation6 + $0x38] sm:$0xff]   ;;  %v957_v16 = vld [vmem:[#allocation3] ss:$8 sps:$4 sm:$0xff]   ;;  %p1050_p2 = scmp.ne.s32.totalorder %s851_s8, %s1049_s9  ;;  %p1055_p4 = scmp.lt.s32.totalorder %s1049_s9, %s1049_s9 }
  0x2d   :  { %914 = vmatpush3.bf16.msra.mxu0 %v944_v3  ;;  %v959_v17 = vld [vmem:[#allocation3 + $0x4] ss:$8 sps:$4 sm:$0xff]   ;;  %v960_v18 = vld [vmem:[#allocation3 + $0x10] ss:$8 sps:$4 sm:$0xff]   ;;  %v962_v19 = vld [vmem:[#allocation3 + $0x14] ss:$8 sps:$4 sm:$0xff]   ;;  %v240_v23 = vunpack.i.l.bf16 %v957_v16  ;;  %v241_v24 = vunpack.i.h.bf16 %v957_v16 }
  0x2e   :  { %915 = vmatprep.subr.bf16.mxu0 %v945_v4  ;;  %v963_v20 = vld [vmem:[#allocation3 + $0x20] ss:$8 sps:$4 sm:$0xff]   ;;  %v965_v21 = vld [vmem:[#allocation3 + $0x24] ss:$8 sps:$4 sm:$0xff]   ;;  %v966_v22 = vld [vmem:[#allocation3 + $0x30] ss:$8 sps:$4 sm:$0xff]   ;;  %v250_v27 = vunpack.i.l.bf16 %v959_v17  ;;  %v251_v28 = vunpack.i.h.bf16 %v959_v17  ;;  %v260_v29 = vunpack.i.l.bf16 %v960_v18  ;;  %v261_v30 = vunpack.i.h.bf16 %v960_v18  ;;  %p1056_p5 = por %p1055_p4, %p1054_p3 }
  0x2f   :  { %v968_v25 = vld [vmem:[#allocation3 + $0x34] ss:$8 sps:$4 sm:$0xff]   ;;  %v969_v26 = vld [vmem:[#allocation3 + $0x40] ss:$8 sps:$4 sm:$0xff]   ;;  %v1127_v31 = vld [vmem:[#allocation3 + $0x44] ss:$8 sps:$4 sm:$0xff]   ;;  %v242_v32 = vmax.f32 %v240_v23, %v241_v24  ;;  %v270_v33 = vunpack.i.l.bf16 %v962_v19  ;;  %v271_v34 = vunpack.i.h.bf16 %v962_v19  ;;  %v280_v35 = vunpack.i.l.bf16 %v963_v20 }
  0x30   :  { %v1129_v36 = vld [vmem:[#allocation3 + $0x50] ss:$8 sps:$4 sm:$0xff]   ;;  %v252_v37 = vmax.f32 %v250_v27, %v251_v28  ;;  %v262_v38 = vmax.f32 %v260_v29, %v261_v30  ;;  %v281_v39 = vunpack.i.h.bf16 %v963_v20  ;;  %v290_v40 = vunpack.i.l.bf16 %v965_v21  ;;  %v1131_v41 = vld [vmem:[#allocation3 + $0x54] ss:$8 sps:$4 sm:$0xff]   ;;  %v1133_v42 = vld [vmem:[#allocation3 + $0x60] ss:$8 sps:$4 sm:$0xff]   ;;  %p1057_p6 = pnand %p1056_p5, %p1050_p2 }
  0x31   :  { %916 = vmatpush3.bf16.msra.mxu0 %v946_v5  ;;  %v272_v43 = vmax.f32 %v270_v33, %v271_v34  ;;  %v291_v44 = vunpack.i.h.bf16 %v965_v21  ;;  %v300_v45 = vunpack.i.l.bf16 %v966_v22  ;;  %v301_v46 = vunpack.i.h.bf16 %v966_v22 }
  0x32   :  { %917 = vmatprep.subr.bf16.mxu0 %v947_v6  ;;  %v282_v47 = vmax.f32 %v280_v35, %v281_v39  ;;  %v310_v48 = vunpack.i.l.bf16 %v968_v25  ;;  %v311_v49 = vunpack.i.h.bf16 %v968_v25  ;;  %v320_v50 = vunpack.i.l.bf16 %v969_v26 }
  0x33   :  { %v292_v51 = vmax.f32 %v290_v40, %v291_v44  ;;  %v302_v52 = vmax.f32 %v300_v45, %v301_v46  ;;  %v321_v53 = vunpack.i.h.bf16 %v969_v26  ;;  %v330_v54 = vunpack.i.l.bf16 %v1127_v31 }
  0x34   :  { %v312_v55 = vmax.f32 %v310_v48, %v311_v49  ;;  %v331_v56 = vunpack.i.h.bf16 %v1127_v31  ;;  %v340_v57 = vunpack.i.l.bf16 %v1129_v36  ;;  %v341_v58 = vunpack.i.h.bf16 %v1129_v36  ;;  %v978_v48 = vld [vmem:[#allocation3 + $0x70] ss:$8 sps:$4 sm:$0xff]  }
  0x35   :  { %918 = vmatpush3.bf16.msra.mxu0 %v948_v7  ;;  %v1139_v59 = vmax.f32 %v320_v50, %v321_v53  ;;  %v350_v60 = vunpack.i.l.bf16 %v1131_v41  ;;  %v351_v61 = vunpack.i.h.bf16 %v1131_v41  ;;  %v360_v62 = vunpack.i.l.bf16 %v1133_v42 }
  0x36   :  { %919 = vmatprep.subr.bf16.mxu0 %v949_v8  ;;  %v243_v63 = vrot.slane %v242_v32, 4  ;;  %v253_v0 = vrot.slane %v252_v37, 4  ;;  %v263_v1 = vrot.slane %v262_v38, 4  ;;  %v273_v2 = vrot.slane %v272_v43, 4 }
  0x37   :  { %v283_v3 = vrot.slane %v282_v47, 4  ;;  %v293_v4 = vrot.slane %v292_v51, 4  ;;  %v303_v5 = vrot.slane %v302_v52, 4  ;;  %v313_v6 = vrot.slane %v312_v55, 4 }
  0x38   :  { %v244_v7 = vmax.f32 %v242_v32, %v243_v63  ;;  %v254_v8 = vmax.f32 %v252_v37, %v253_v0 }
  0x39   :  { %920 = vmatpush3.bf16.msra.mxu0 %v950_v9  ;;  %v264_v9 = vmax.f32 %v262_v38, %v263_v1  ;;  %v980_v1 = vld [vmem:[#allocation3 + $0x74] ss:$8 sps:$4 sm:$0xff]  }
  0x3a   :  { %921 = vmatprep.subr.bf16.mxu0 %v951_v10  ;;  %v274_v10 = vmax.f32 %v272_v43, %v273_v2  ;;  %v255_v16 = vrot.slane %v254_v8, 2 }
  0x3b   :  { %v265_v17 = vrot.slane %v264_v9, 2 }
  0x3c   :  { %v275_v18 = vrot.slane %v274_v10, 2  ;;  %v256_v24 = vmax.f32 %v254_v8, %v255_v16  ;;  %v342_v8 = vmax.f32 %v340_v57, %v341_v58  ;;  %v381_v57 = vunpack.i.h.bf16 %v978_v48 }
  0x3d   :  { %922 = vmatpush3.bf16.msra.mxu0 %v952_v11  ;;  %v284_v11 = vmax.f32 %v282_v47, %v283_v3  ;;  %v266_v25 = vmax.f32 %v264_v9, %v265_v17  ;;  %v977_v47 = vld [vmem:[#allocation3 + $0x64] ss:$8 sps:$4 sm:$0xff]   ;;  %v352_v9 = vmax.f32 %v350_v60, %v351_v61  ;;  %v390_v58 = vunpack.i.l.bf16 %v980_v1 }
  0x3e   :  { %923 = vmatprep.subr.bf16.mxu0 %v953_v12  ;;  %v294_v12 = vmax.f32 %v292_v51, %v293_v4  ;;  %v276_v26 = vmax.f32 %v274_v10, %v275_v18  ;;  %v257_v33 = vrot.slane %v256_v24, 1  ;;  %v361_v10 = vunpack.i.h.bf16 %v1133_v42 }
  0x3f   :  { %v285_v19 = vrot.slane %v284_v11, 2  ;;  %v267_v34 = vrot.slane %v266_v25, 1  ;;  %v343_v31 = vrot.slane %v342_v8, 4 }
  0x40   :  { %v295_v20 = vrot.slane %v294_v12, 2  ;;  %v277_v35 = vrot.slane %v276_v26, 1  ;;  %v1146_v44 = vmax.f32 %v256_v24, %v257_v33 }
  0x41   :  { %924 = vmatpush3.bf16.msra.mxu0 %v954_v13  ;;  %v304_v13 = vmax.f32 %v302_v52, %v303_v5  ;;  %v286_v27 = vmax.f32 %v284_v11, %v285_v19  ;;  %v1148_v45 = vmax.f32 %v266_v25, %v267_v34  ;;  %v370_v11 = vunpack.i.l.bf16 %v977_v47 }
  0x42   :  { %925 = vmatprep.subr.bf16.mxu0 %v955_v14  ;;  %v314_v14 = vmax.f32 %v312_v55, %v313_v6  ;;  %v296_v28 = vmax.f32 %v294_v12, %v295_v20  ;;  %v1150_v46 = vmax.f32 %v276_v26, %v277_v35  ;;  %v259_v55 = vpack.i.bf16 %v1146_v44, %v1146_v44  ;;  %v981_v35 = vld [vmem:[#allocation3 + $0x80] ss:$8 sps:$4 sm:$0xff]  }
  0x43   :  { %v305_v21 = vrot.slane %v304_v13, 2  ;;  %v287_v37 = vrot.slane %v286_v27, 1  ;;  %v269_v63 = vpack.i.bf16 %v1148_v45, %v1148_v45  ;;  %v323_v6 = vrot.slane %v1139_v59, 4 }
  0x44   :  { %v315_v22 = vrot.slane %v314_v14, 2  ;;  %v297_v38 = vrot.slane %v296_v28, 1  ;;  %v279_v0 = vpack.i.bf16 %v1150_v46, %v1150_v46  ;;  %v371_v12 = vunpack.i.h.bf16 %v977_v47 }
  0x45   :  { %926 = vmatpush3.bf16.msra.mxu0 %v956_v15  ;;  %v245_v15 = vrot.slane %v244_v7, 2  ;;  %v306_v29 = vmax.f32 %v304_v13, %v305_v21  ;;  %v1152_v49 = vmax.f32 %v286_v27, %v287_v37  ;;  %v380_v13 = vunpack.i.l.bf16 %v978_v48 }
  0x46   :  { %v316_v30 = vmax.f32 %v314_v14, %v315_v22  ;;  %v1154_v50 = vmax.f32 %v296_v28, %v297_v38  ;;  %v324_v14 = vmax.f32 %v1139_v59, %v323_v6  ;;  %v372_v36 = vmax.f32 %v370_v11, %v371_v12 }
  0x47   :  { %v246_v23 = vmax.f32 %v244_v7, %v245_v15  ;;  %v307_v39 = vrot.slane %v306_v29, 1  ;;  %v289_v2 = vpack.i.bf16 %v1152_v49, %v1152_v49  ;;  %v332_v7 = vmax.f32 %v330_v54, %v331_v56 }
  0x48   :  { %v317_v40 = vrot.slane %v316_v30, 1  ;;  %v299_v3 = vpack.i.bf16 %v1154_v50, %v1154_v50  ;;  %v353_v54 = vrot.slane %v352_v9, 4  ;;  %v362_v56 = vmax.f32 %v360_v62, %v361_v10 }
  0x49   :  { %v247_v32 = vrot.slane %v246_v23, 1  ;;  %v1156_v51 = vmax.f32 %v306_v29, %v307_v39  ;;  %v333_v15 = vrot.slane %v332_v7, 4  ;;  %v325_v16 = vrot.slane %v324_v14, 2 }
  0x4a   :  { %v1158_v52 = vmax.f32 %v316_v30, %v317_v40  ;;  %v344_v41 = vmax.f32 %v342_v8, %v343_v31  ;;  %v354_v60 = vmax.f32 %v352_v9, %v353_v54  ;;  %v363_v61 = vrot.slane %v362_v56, 4  ;;  %v984_v8 = vld [vmem:[#allocation3 + $0x90] ss:$8 sps:$4 sm:$0xff]   ;;  %v986_v54 = vld [vmem:[#allocation3 + $0x94] ss:$8 sps:$4 sm:$0xff]  }
  0x4b   :  { %v1144_v43 = vmax.f32 %v246_v23, %v247_v32  ;;  %v309_v4 = vpack.i.bf16 %v1156_v51, %v1156_v51  ;;  %v334_v17 = vmax.f32 %v332_v7, %v333_v15  ;;  %v373_v18 = vrot.slane %v372_v36, 4  ;;  %v983_v7 = vld [vmem:[#allocation3 + $0x84] ss:$8 sps:$4 sm:$0xff]  }
  0x4c   :  { %v319_v5 = vpack.i.bf16 %v1158_v52, %v1158_v52  ;;  %v382_v19 = vmax.f32 %v380_v13, %v381_v57  ;;  %v391_v20 = vunpack.i.h.bf16 %v980_v1  ;;  %v326_v21 = vmax.f32 %v324_v14, %v325_v16  ;;  %v987_v16 = vld [vmem:[#allocation3 + $0xa0] ss:$8 sps:$4 sm:$0xff]  }
  0x4d   :  { %v249_v53 = vpack.i.bf16 %v1144_v43, %v1144_v43  ;;  %v335_v22 = vrot.slane %v334_v17, 2  ;;  %v345_v59 = vrot.slane %v344_v41, 2  ;;  %v355_v23 = vrot.slane %v354_v60, 2 }
  0x4e   :  { %v364_v24 = vmax.f32 %v362_v56, %v363_v61  ;;  %v374_v25 = vmax.f32 %v372_v36, %v373_v18  ;;  %v383_v26 = vrot.slane %v382_v19, 4  ;;  %v392_v42 = vmax.f32 %v390_v58, %v391_v20 }
  0x4f   :  { %v327_v62 = vrot.slane %v326_v21, 1  ;;  %v336_v27 = vmax.f32 %v334_v17, %v335_v22  ;;  %v346_v28 = vmax.f32 %v344_v41, %v345_v59  ;;  %v356_v29 = vmax.f32 %v354_v60, %v355_v23  ;;  %v989_v22 = vld [vmem:[#allocation3 + $0xa4] ss:$8 sps:$4 sm:$0xff]  }
  0x50   :  { %v365_v30 = vrot.slane %v364_v24, 2  ;;  %v375_v32 = vrot.slane %v374_v25, 2  ;;  %v384_v33 = vmax.f32 %v382_v19, %v383_v26  ;;  %v393_v34 = vrot.slane %v392_v42, 4 }
  0x51   :  { %v1193_v37 = vmax.f32 %v326_v21, %v327_v62  ;;  %v337_v38 = vrot.slane %v336_v27, 1  ;;  %v347_v39 = vrot.slane %v346_v28, 1  ;;  %v357_v40 = vrot.slane %v356_v29, 1 }
  0x52   :  { %v366_v47 = vmax.f32 %v364_v24, %v365_v30  ;;  %v376_v48 = vmax.f32 %v374_v25, %v375_v32  ;;  %v385_v1 = vrot.slane %v384_v33, 2  ;;  %v394_v6 = vmax.f32 %v392_v42, %v393_v34 }
  0x53   :  { %v329_v9 = vpack.i.bf16 %v1193_v37, %v1193_v37  ;;  %v1197_v10 = vmax.f32 %v336_v27, %v337_v38  ;;  %v1199_v11 = vmax.f32 %v346_v28, %v347_v39  ;;  %v1201_v12 = vmax.f32 %v356_v29, %v357_v40  ;;  %v990_v28 = vld [vmem:[#allocation3 + $0xb0] ss:$8 sps:$4 sm:$0xff]   ;;  %v992_v40 = vld [vmem:[#allocation3 + $0xb4] ss:$8 sps:$4 sm:$0xff]  }
  0x54   :  { %v367_v13 = vrot.slane %v366_v47, 1  ;;  %v377_v14 = vrot.slane %v376_v48, 1  ;;  %v386_v15 = vmax.f32 %v384_v33, %v385_v1  ;;  %v395_v31 = vrot.slane %v394_v6, 2 }
  0x55   :  { %v400_v58 = vunpack.i.l.bf16 %v981_v35  ;;  %v401_v18 = vunpack.i.h.bf16 %v981_v35  ;;  %v410_v19 = vunpack.i.l.bf16 %v983_v7  ;;  %v411_v20 = vunpack.i.h.bf16 %v983_v7 }
  0x56   :  { %v1209_v17 = vmax.f32 %v366_v47, %v367_v13  ;;  %v1211_v41 = vmax.f32 %v376_v48, %v377_v14  ;;  %v387_v60 = vrot.slane %v386_v15, 1  ;;  %v396_v61 = vmax.f32 %v394_v6, %v395_v31 }
  0x57   :  { %v420_v21 = vunpack.i.l.bf16 %v984_v8  ;;  %v402_v26 = vmax.f32 %v400_v58, %v401_v18  ;;  %v412_v42 = vmax.f32 %v410_v19, %v411_v20  ;;  %v421_v62 = vunpack.i.h.bf16 %v984_v8 }
  0x58   :  { %v1217_v24 = vmax.f32 %v386_v15, %v387_v60  ;;  %v397_v25 = vrot.slane %v396_v61, 1  ;;  %v430_v27 = vunpack.i.l.bf16 %v986_v54  ;;  %v431_v32 = vunpack.i.h.bf16 %v986_v54 }
  0x59   :  { %v440_v33 = vunpack.i.l.bf16 %v987_v16  ;;  %v403_v34 = vrot.slane %v402_v26, 4  ;;  %v413_v35 = vrot.slane %v412_v42, 4  ;;  %v422_v38 = vmax.f32 %v420_v21, %v421_v62 }
  0x5a   :  { %v1221_v30 = vmax.f32 %v396_v61, %v397_v25  ;;  %v441_v39 = vunpack.i.h.bf16 %v987_v16  ;;  %v432_v48 = vmax.f32 %v430_v27, %v431_v32  ;;  %v450_v1 = vunpack.i.l.bf16 %v989_v22 }
  0x5b   :  { %v451_v6 = vunpack.i.h.bf16 %v989_v22  ;;  %v404_v7 = vmax.f32 %v402_v26, %v403_v34  ;;  %v414_v8 = vmax.f32 %v412_v42, %v413_v35  ;;  %v423_v13 = vrot.slane %v422_v38, 4 }
  0x5c   :  { %v442_v14 = vmax.f32 %v440_v33, %v441_v39  ;;  %v433_v15 = vrot.slane %v432_v48, 4  ;;  %v460_v58 = vunpack.i.l.bf16 %v990_v28  ;;  %v461_v54 = vunpack.i.h.bf16 %v990_v28 }
  0x5d   :  { %v452_v31 = vmax.f32 %v450_v1, %v451_v6  ;;  %v405_v60 = vrot.slane %v404_v7, 2  ;;  %v415_v61 = vrot.slane %v414_v8, 2  ;;  %v424_v18 = vmax.f32 %v422_v38, %v423_v13 }
  0x5e   :  { %v443_v19 = vrot.slane %v442_v14, 4  ;;  %v434_v16 = vmax.f32 %v432_v48, %v433_v15  ;;  %v462_v21 = vmax.f32 %v460_v58, %v461_v54  ;;  %v470_v25 = vunpack.i.l.bf16 %v992_v40  ;;  %v993_v48 = vld [vmem:[#allocation3 + $0xc0] ss:$8 sps:$4 sm:$0xff]  }
  0x5f   :  { %v453_v20 = vrot.slane %v452_v31, 4  ;;  %v406_v62 = vmax.f32 %v404_v7, %v405_v60  ;;  %v416_v27 = vmax.f32 %v414_v8, %v415_v61  ;;  %v425_v32 = vrot.slane %v424_v18, 2 }
  0x60   :  { %v444_v22 = vmax.f32 %v442_v14, %v443_v19  ;;  %v435_v26 = vrot.slane %v434_v16, 2  ;;  %v463_v34 = vrot.slane %v462_v21, 4  ;;  %v471_v33 = vunpack.i.h.bf16 %v992_v40  ;;  %v995_v40 = vld [vmem:[#allocation3 + $0xc4] ss:$8 sps:$4 sm:$0xff]  }
  0x61   :  { %v454_v42 = vmax.f32 %v452_v31, %v453_v20  ;;  %v407_v35 = vrot.slane %v406_v62, 1  ;;  %v417_v39 = vrot.slane %v416_v27, 1  ;;  %v426_v1 = vmax.f32 %v424_v18, %v425_v32  ;;  %v996_v20 = vld [vmem:[#allocation3 + $0xd0] ss:$8 sps:$4 sm:$0xff]   ;;  %v998_v32 = vld [vmem:[#allocation3 + $0xd4] ss:$8 sps:$4 sm:$0xff]  }
  0x62   :  { %v445_v28 = vrot.slane %v444_v22, 2  ;;  %v436_v6 = vmax.f32 %v434_v16, %v435_v26  ;;  %v464_v38 = vmax.f32 %v462_v21, %v463_v34  ;;  %v472_v13 = vmax.f32 %v470_v25, %v471_v33  ;;  %v999_v34 = vld [vmem:[#allocation3 + $0xe0] ss:$8 sps:$4 sm:$0xff]   ;;  %v1002_v33 = vld [vmem:[#allocation3 + $0xf0] ss:$8 sps:$4 sm:$0xff]  }
  0x63   :  { %v455_v47 = vrot.slane %v454_v42, 2  ;;  %v1225_v15 = vmax.f32 %v406_v62, %v407_v35  ;;  %v1227_v58 = vmax.f32 %v416_v27, %v417_v39  ;;  %v427_v7 = vrot.slane %v426_v1, 1 }
  0x64   :  { %v446_v8 = vmax.f32 %v444_v22, %v445_v28  ;;  %v437_v14 = vrot.slane %v436_v6, 1  ;;  %v465_v31 = vrot.slane %v464_v38, 2  ;;  %v473_v60 = vrot.slane %v472_v13, 4 }
  0x65   :  { %v456_v54 = vmax.f32 %v454_v42, %v455_v47  ;;  %v1233_v19 = vmax.f32 %v426_v1, %v427_v7  ;;  %v480_v26 = vunpack.i.l.bf16 %v993_v48  ;;  %v481_v42 = vunpack.i.h.bf16 %v993_v48  ;;  %v1001_v7 = vld [vmem:[#allocation3 + $0xe4] ss:$8 sps:$4 sm:$0xff]  }
  0x66   :  { %v447_v16 = vrot.slane %v446_v8, 1  ;;  %v1235_v21 = vmax.f32 %v436_v6, %v437_v14  ;;  %v466_v62 = vmax.f32 %v464_v38, %v465_v31  ;;  %v474_v27 = vmax.f32 %v472_v13, %v473_v60 }
  0x67   :  { %v457_v25 = vrot.slane %v456_v54, 1  ;;  %v482_v6 = vmax.f32 %v480_v26, %v481_v42  ;;  %v490_v38 = vunpack.i.l.bf16 %v995_v40  ;;  %v491_v13 = vunpack.i.h.bf16 %v995_v40 }
  0x68   :  { %v1239_v22 = vmax.f32 %v446_v8, %v447_v16  ;;  %v467_v39 = vrot.slane %v466_v62, 1  ;;  %v475_v1 = vrot.slane %v474_v27, 2  ;;  %v500_v31 = vunpack.i.l.bf16 %v996_v20  ;;  %v1004_v8 = vld [vmem:[#allocation3 + $0xf4] ss:$8 sps:$4 sm:$0xff]  }
  0x69   :  { %v1243_v35 = vmax.f32 %v456_v54, %v457_v25  ;;  %v483_v60 = vrot.slane %v482_v6, 4  ;;  %v492_v16 = vmax.f32 %v490_v38, %v491_v13  ;;  %v501_v54 = vunpack.i.h.bf16 %v996_v20 }
  0x6a   :  { %v1249_v14 = vmax.f32 %v466_v62, %v467_v39  ;;  %v476_v48 = vmax.f32 %v474_v27, %v475_v1  ;;  %v510_v25 = vunpack.i.l.bf16 %v998_v32  ;;  %v511_v26 = vunpack.i.h.bf16 %v998_v32 }
  0x6b   :  { %v520_v42 = vunpack.i.l.bf16 %v999_v34  ;;  %v484_v40 = vmax.f32 %v482_v6, %v483_v60  ;;  %v493_v18 = vrot.slane %v492_v16, 4  ;;  %v502_v61 = vmax.f32 %v500_v31, %v501_v54 }
  0x6c   :  { %v477_v28 = vrot.slane %v476_v48, 1  ;;  %v521_v29 = vunpack.i.h.bf16 %v999_v34  ;;  %v512_v27 = vmax.f32 %v510_v25, %v511_v26  ;;  %v530_v39 = vunpack.i.l.bf16 %v1001_v7 }
  0x6d   :  { %v531_v1 = vunpack.i.h.bf16 %v1001_v7  ;;  %v485_v38 = vrot.slane %v484_v40, 2  ;;  %v494_v20 = vmax.f32 %v492_v16, %v493_v18  ;;  %v503_v13 = vrot.slane %v502_v61, 4 }
  0x6e   :  { %v1253_v62 = vmax.f32 %v476_v48, %v477_v28  ;;  %v522_v23 = vmax.f32 %v520_v42, %v521_v29  ;;  %v513_v59 = vrot.slane %v512_v27, 4  ;;  %v540_v57 = vunpack.i.l.bf16 %v1002_v33 }
  0x6f   :  { %v532_v32 = vmax.f32 %v530_v39, %v531_v1  ;;  %v486_v6 = vmax.f32 %v484_v40, %v485_v38  ;;  %v495_v60 = vrot.slane %v494_v20, 2  ;;  %v504_v31 = vmax.f32 %v502_v61, %v503_v13 }
  0x70   :  { %v523_v34 = vrot.slane %v522_v23, 4  ;;  %v514_v54 = vmax.f32 %v512_v27, %v513_v59  ;;  %v541_v48 = vunpack.i.h.bf16 %v1002_v33  ;;  %v550_v25 = vunpack.i.l.bf16 %v1004_v8 }
  0x71   :  { %v533_v28 = vrot.slane %v532_v32, 4  ;;  %v487_v26 = vrot.slane %v486_v6, 1  ;;  %v496_v7 = vmax.f32 %v494_v20, %v495_v60  ;;  %v505_v36 = vrot.slane %v504_v31, 2 }
  0x72   :  { %v524_v18 = vmax.f32 %v522_v23, %v523_v34  ;;  %v515_v16 = vrot.slane %v514_v54, 2  ;;  %v542_v42 = vmax.f32 %v540_v57, %v541_v48  ;;  %v551_v56 = vunpack.i.h.bf16 %v1004_v8 }
  0x73   :  { %v534_v29 = vmax.f32 %v532_v32, %v533_v28  ;;  %v1257_v47 = vmax.f32 %v486_v6, %v487_v26  ;;  %v497_v39 = vrot.slane %v496_v7, 1  ;;  %v506_v1 = vmax.f32 %v504_v31, %v505_v36 }
  0x74   :  { %v525_v40 = vrot.slane %v524_v18, 2  ;;  %v516_v38 = vmax.f32 %v514_v54, %v515_v16  ;;  %v543_v13 = vrot.slane %v542_v42, 4  ;;  %v552_v59 = vmax.f32 %v550_v25, %v551_v56 }
  0x75   :  { %v535_v61 = vrot.slane %v534_v29, 2  ;;  %v489_v33 = vpack.i.bf16 %v1257_v47, %v1257_v47  ;;  %v498_v27 = vmax.f32 %v496_v7, %v497_v39  ;;  %v507_v20 = vrot.slane %v506_v1, 1 }
  0x76   :  { %v526_v60 = vmax.f32 %v524_v18, %v525_v40  ;;  %v517_v23 = vrot.slane %v516_v38, 1  ;;  %v544_v32 = vmax.f32 %v542_v42, %v543_v13  ;;  %v553_v57 = vrot.slane %v552_v59, 4 }
  0x77   :  { %v536_v34 = vmax.f32 %v534_v29, %v535_v61  ;;  %v499_v8 = vpack.i.bf16 %v498_v27, %v498_v27  ;;  %v508_v6 = vmax.f32 %v506_v1, %v507_v20  ;;  %v594_v36 = vunpack.c.l.b16 %v249_v53 }
  0x78   :  { %v527_v28 = vrot.slane %v526_v60, 1  ;;  %v518_v31 = vmax.f32 %v516_v38, %v517_v23  ;;  %v545_v56 = vrot.slane %v544_v32, 2  ;;  %v554_v48 = vmax.f32 %v552_v59, %v553_v57 }
  0x79   :  { %v537_v54 = vrot.slane %v536_v34, 1  ;;  %v509_v25 = vpack.i.bf16 %v508_v6, %v508_v6  ;;  %v595_v26 = vunpack.c.l.b16 %v259_v55  ;;  %v596_v7 = vunpack.c.l.b16 %v269_v63 }
  0x7a   :  { %v528_v47 = vmax.f32 %v526_v60, %v527_v28  ;;  %v519_v18 = vpack.i.bf16 %v518_v31, %v518_v31  ;;  %v546_v29 = vmax.f32 %v544_v32, %v545_v56  ;;  %v555_v43 = vrot.slane %v554_v48, 2 }
  0x7b   :  { %v538_v16 = vmax.f32 %v536_v34, %v537_v54  ;;  %v597_v42 = vunpack.c.l.b16 %v279_v0  ;;  %v598_v44 = vunpack.c.l.b16 %v289_v2  ;;  %v599_v45 = vunpack.c.l.b16 %v299_v3 }
  0x7c   :  { %v529_v53 = vpack.i.bf16 %v528_v47, %v528_v47  ;;  %v547_v63 = vrot.slane %v546_v29, 1  ;;  %v556_v39 = vmax.f32 %v554_v48, %v555_v43  ;;  %v600_v1 = vunpack.c.l.b16 %v309_v4 }
  0x7d   :  { %v539_v55 = vpack.i.bf16 %v538_v16, %v538_v16  ;;  %v601_v46 = vunpack.c.l.b16 %v319_v5  ;;  %v602_v49 = vunpack.c.l.b16 %v329_v9  ;;  %v1379_v50 = vpack.i.bf16 %v1197_v10, %v1197_v10 }
  0x7e   :  { %v1380_v2 = vpack.i.bf16 %v1199_v11, %v1199_v11  ;;  %v548_v51 = vmax.f32 %v546_v29, %v547_v63  ;;  %v557_v4 = vrot.slane %v556_v39, 1  ;;  %v1381_v40 = vpack.i.bf16 %v1201_v12, %v1201_v12 }
  0x7f   :  { %v603_v0 = vunpack.c.l.b16 %v1379_v50  ;;  %v1382_v5 = vpack.i.bf16 %v1209_v17, %v1209_v17  ;;  %v1383_v9 = vpack.i.bf16 %v1211_v41, %v1211_v41  ;;  %v1384_v11 = vpack.i.bf16 %v1217_v24, %v1217_v24 }
  0x80   :  { %v604_v3 = vunpack.c.l.b16 %v1380_v2  ;;  %v605_v52 = vunpack.c.l.b16 %v1381_v40  ;;  %v1385_v61 = vpack.i.bf16 %v1221_v30, %v1221_v30  ;;  %v1386_v12 = vpack.i.bf16 %v1225_v15, %v1225_v15 }
  0x81   :  { %v606_v37 = vunpack.c.l.b16 %v1382_v5  ;;  %v607_v10 = vunpack.c.l.b16 %v1383_v9  ;;  %v608_v38 = vunpack.c.l.b16 %v1384_v11  ;;  %v549_v17 = vpack.i.bf16 %v548_v51, %v548_v51 }
  0x82   :  { %v609_v13 = vunpack.c.l.b16 %v1385_v61  ;;  %v610_v59 = vunpack.c.l.b16 %v1386_v12  ;;  %v558_v27 = vmax.f32 %v556_v39, %v557_v4  ;;  %v1387_v20 = vpack.i.bf16 %v1227_v58, %v1227_v58 }
  0x83   :  { %v1388_v60 = vpack.i.bf16 %v1233_v19, %v1233_v19  ;;  %v1389_v23 = vpack.i.bf16 %v1235_v21, %v1235_v21  ;;  %v1390_v34 = vpack.i.bf16 %v1239_v22, %v1239_v22  ;;  %v1391_v32 = vpack.i.bf16 %v1243_v35, %v1243_v35 }
  0x84   :  { %v611_v41 = vunpack.c.l.b16 %v1387_v20  ;;  %v1392_v58 = vpack.i.bf16 %v1249_v14, %v1249_v14  ;;  %v559_v28 = vpack.i.bf16 %v558_v27, %v558_v27  ;;  %v1393_v19 = vpack.i.bf16 %v1253_v62, %v1253_v62 }
  0x85   :  { %v612_v24 = vunpack.c.l.b16 %v1388_v60  ;;  %v613_v30 = vunpack.c.l.b16 %v1389_v23  ;;  %v614_v15 = vunpack.c.l.b16 %v1390_v34  ;;  %v615_v57 = vunpack.c.l.b16 %v1391_v32 }
  0x86   :  { %v616_v6 = vunpack.c.l.b16 %v1392_v58  ;;  %v617_v31 = vunpack.c.l.b16 %v1393_v19  ;;  %v618_v54 = vunpack.c.l.b16 %v489_v33  ;;  %v619_v21 = vunpack.c.l.b16 %v499_v8 }
  0x87   :  { %v620_v56 = vunpack.c.l.b16 %v509_v25  ;;  %v621_v48 = vunpack.c.l.b16 %v519_v18  ;;  %v622_v47 = vunpack.c.l.b16 %v529_v53  ;;  %v623_v22 = vunpack.c.l.b16 %v539_v55 }
  0x88   :  { %v624_v16 = vunpack.c.l.b16 %v549_v17  ;;  %v625_v29 = vunpack.c.l.b16 %v559_v28  ;;  %v627_v35 = vsel %vm626_vm0, %v596_v7, %v594_v36  ;;  %v640_v43 = vsel %vm626_vm0, %v597_v42, %v595_v26 }
  0x89   :  { %v629_v14 = vsel %vm628_vm1, %v598_v44, %v627_v35  ;;  %v641_v63 = vsel %vm628_vm1, %v599_v45, %v640_v43  ;;  %v647_v39 = vsel %vm626_vm0, %v612_v24, %v610_v59  ;;  %v654_v62 = vsel %vm626_vm0, %v613_v30, %v611_v41 }
  0x8a   :  { %v631_v33 = vsel %vm630_vm2, %v600_v1, %v629_v14  ;;  %v642_v8 = vsel %vm630_vm2, %v601_v46, %v641_v63  ;;  %v648_v25 = vsel %vm628_vm1, %v614_v15, %v647_v39  ;;  %v655_v18 = vsel %vm628_vm1, %v615_v57, %v654_v62 }
  0x8b   :  { %v633_v36 = vsel %vm632_vm3, %v602_v49, %v631_v33  ;;  %v643_v26 = vsel %vm632_vm3, %v603_v0, %v642_v8  ;;  %v649_v7 = vsel %vm630_vm2, %v616_v6, %v648_v25  ;;  %v656_v53 = vsel %vm630_vm2, %v617_v31, %v655_v18 }
  0x8c   :  { %v635_v42 = vsel %vm634_vm4, %v604_v3, %v633_v36  ;;  %v644_v44 = vsel %vm634_vm4, %v605_v52, %v643_v26  ;;  %v650_v45 = vsel %vm632_vm3, %v618_v54, %v649_v7  ;;  %v657_v55 = vsel %vm632_vm3, %v619_v21, %v656_v53 }
  0x8d   :  { %v637_v1 = vsel %vm636_vm5, %v606_v37, %v635_v42  ;;  %v645_v46 = vsel %vm636_vm5, %v607_v10, %v644_v44  ;;  %v651_v49 = vsel %vm634_vm4, %v620_v56, %v650_v45  ;;  %v658_v50 = vsel %vm634_vm4, %v621_v48, %v657_v55 }
  0x8e   :  { %v639_v0 = vsel %vm638_vm6, %v608_v38, %v637_v1  ;;  %v646_v2 = vsel %vm638_vm6, %v609_v13, %v645_v46  ;;  %v652_v3 = vsel %vm636_vm5, %v622_v47, %v651_v49  ;;  %v659_v51 = vsel %vm636_vm5, %v623_v22, %v658_v50 }
  0x8f   :  { %v653_v4 = vsel %vm638_vm6, %v624_v16, %v652_v3  ;;  %v660_v40 = vsel %vm638_vm6, %v625_v29, %v659_v51  ;;  %v1083_v37 = vmov 4286644096  }
  0x90   :  { %v661_v52 = vpack.c.b16 %v653_v4, %v639_v0  ;;  %v662_v5 = vpack.c.b16 %v660_v40, %v646_v2 }
  0x92   :  { %v665_v9 = vmax.bf16 %v1083_v37, %v661_v52  ;;  %v666_v10 = vmax.bf16 %v1083_v37, %v662_v5 }
  0x94   :  { %834 = vmatprep.mubr.bf16.mxu0 %v666_v10 }
  0x95   :  { %835 = vmatmul.mubr.bf16.vlgmr.msra.gmra.mrb[0].mxu0 %v665_v9 }
 0x168   :  { %v927_v11 = vpop.f32.mrb[0].mxu0 }
 0x169   :  { %v928_v61 = vpop.f32.mrb[1].mxu0 }
 0x16a   :  { %v929_v38 = vadd.f32 %v928_v61, %v927_v11  ;;  %v930_v13 = vpop.f32.mrb[2].mxu0 }
 0x16b   :  { %v931_v12 = vpop.f32.mrb[3].mxu0 }
 0x16c   :  { %843 = vst [vmem:[#allocation8] sm:$0xff] %v929_v38  ;;  %v932_v59 = vadd.f32 %v931_v12, %v930_v13 }
 0x16e   :  { %844 = vst [vmem:[#allocation8 + $0x8] sm:$0xff] %v932_v59 }
 0x16f   :  { %1060 = shalt.err (!%p1057_p6)
}
 0x170   :  { %s1061_s12 = scalar_lea.hbm %s1378_s2, 256 }
 0x171   :  { %p1062_p7 = scmp.ne.s32.totalorder %s1378_s2, %s1061_s12  ;;  %p1065_p8 = scmp.lt.u32.totalorder %s1061_s12, %s1378_s2 }
 0x173   :  { %p1067_p9 = pnand %p1065_p8, %p1062_p7 }
 0x175   :  { %1070 = shalt.err (!%p1067_p9)
}
 0x176   :  { %856 = dma.vmem_to_hbm [thread:$0]  %s851_s8, 256, %s1378_s2, [#allocation5], %s1078_s19, %s1078_s19, %s1079_s20  }
 0x177   :  { %1075 = dma.done.wait [#allocation5], 256  }
 0x178   :  { %1076 = vsyncadd [#allocation5], 4294967040 }
 0x179   :  { %860 = vsyncpa [#allocation4], 1 }
 0x17a   :  { %861 = vsyncpa [#allocation7], 1 }
 0x17b   :  { %862 = vsyncpa [#allocation5], 1 }

</bundles_post_ra>
